<compile_context>
chip_gen: v6e
topology: v6e:2x2x1
jax: 0.10.0
libtpu: 0.0.40
codegen_flags: <defaults>
</compile_context>

<pallas_src>
import math
from functools import partial

import jax
import jax.numpy as jnp
from jax.experimental import pallas as pl
from jax.experimental.pallas import tpu as pltpu


# --------------------------------------------------------------------------
# Kernel
# --------------------------------------------------------------------------
def _sa_token_mixing_kernel(x_ref, gamma_ref, beta_ref,
                            wqkv_ref, bqkv_ref, wo_ref, bo_ref,
                            o_ref, slab_ref, *, nhead, eps, s_valid,
                            compute_dtype, exp_dtype):
    bt, S, D = x_ref.shape                    # block: (Bt, S, D)
    hd = D // nhead
    N = bt * S

    # ---- LayerNorm over features on the flattened (Bt*S, D) slab (f32) ----
    x = x_ref[...].reshape(N, D).astype(jnp.float32)   # leading-dim merge: free
    mean = jnp.mean(x, axis=-1, keepdims=True)
    cent = x - mean
    var = jnp.mean(cent * cent, axis=-1, keepdims=True)
    xn = cent * jax.lax.rsqrt(var + eps)
    xn = (xn * gamma_ref[...] + beta_ref[...]).astype(compute_dtype)

    # ---- Fused, lane-dense QKV projection: one (N, D) @ (D, 3D) matmul ----
    # 1/sqrt(hd) is already folded into the Q columns of wqkv / bqkv.
    qkv = (jnp.dot(xn, wqkv_ref[...], preferred_element_type=jnp.float32)
           + bqkv_ref[...]).astype(compute_dtype)        # (N, 3D)

    # Additive key-padding bias (only materialized when S was padded).
    if s_valid < S:
        valid = jax.lax.broadcasted_iota(jnp.int32, (1, 1, S), 2) < s_valid
        kbias = jnp.where(valid, 0.0, -1e30).astype(jnp.float32)
    else:
        kbias = None

    # ---- Per-head attention.  Static Python loop over heads: per-head lane
    # slices of qkv are cheap VPU/XLU copies; each head's output is stored
    # straight into its lane slot of the staging slab, so the per-head live
    # set stays small (no (N, D) f32 accumulator carried across heads).
    for h in range(nhead):
        q_h = qkv[:, 0 * D + h * hd: 0 * D + (h + 1) * hd].reshape(bt, S, hd)
        k_h = qkv[:, 1 * D + h * hd: 1 * D + (h + 1) * hd].reshape(bt, S, hd)
        v_h = qkv[:, 2 * D + h * hd: 2 * D + (h + 1) * hd].reshape(bt, S, hd)

        # Batched contraction over the Bt batch elements (no explicit K^T).
        s = jnp.einsum('bqd,bkd->bqk', q_h, k_h,
                       preferred_element_type=jnp.float32)    # (Bt, S, S) f32
        if kbias is not None:
            s = s + kbias
        s = s - jnp.max(s, axis=-1, keepdims=True)             # row max in f32
        p = jnp.exp(s.astype(exp_dtype))                       # EUP (bf16 on v6e/v7x)
        denom = jnp.sum(p.astype(jnp.float32), axis=-1, keepdims=True)
        probs = (p.astype(jnp.float32) / denom).astype(compute_dtype)  # exact norm

        o_h = jnp.einsum('bqk,bkd->bqd', probs, v_h,
                         preferred_element_type=jnp.float32)   # (Bt, S, hd) f32
        slab_ref[:, h * hd:(h + 1) * hd] = \
            o_h.reshape(N, hd).astype(compute_dtype)

    # ---- Single full-depth output projection: (N, D) @ (D, D) on the MXU ----
    out = (jnp.dot(slab_ref[...], wo_ref[...],
                   preferred_element_type=jnp.float32) + bo_ref[...])
    o_ref[...] = out.reshape(bt, S, D).astype(o_ref.dtype)


# --------------------------------------------------------------------------
# Chip-aware sizing helpers
# --------------------------------------------------------------------------
def _device_kind():
    try:
        return jax.devices()[0].device_kind.lower()
    except Exception:
        return ""


def _num_tensorcores():
    kind = _device_kind()
    # v4 / v5p (megacore) and v7x have 2 TensorCores per chip; v5e/v6e have 1.
    return 2 if any(t in kind for t in ("v4", "v5p", "v7")) else 1


def _supports_bf16_eup():
    kind = _device_kind()
    return any(t in kind for t in ("v6", "v7"))


def _vmem_capacity_bytes():
    try:
        return int(pltpu.get_tpu_info().vmem_capacity_bytes)
    except Exception:
        return 64 << 20          # conservative (v7x-sized) fallback


def _pick_batch_tile(B, S, D, nhead, *, compute_itemsize, budget_bytes,
                     num_cores):
    """Largest batch tile whose working set fits the VMEM budget.  The
    >= 2-grid-steps clamp only applies on chips with 2 TensorCores."""
    hd = D // nhead
    ci = compute_itemsize
    # Constant weight/bias blocks are double-buffered by the pipeline.
    weight_bytes = 2 * (ci * 4 * D * D + 4 * 6 * D)
    per_b = (4 * 4 * S * D                       # double-buffered f32 x & out blocks
             + ci * S * D                        # normalized slab
             + (4 + ci) * 3 * S * D              # qkv f32 result + compute-dtype copy
             + ci * S * D                        # head-output staging slab
             + 3 * ci * S * hd + 4 * S * hd      # live head q/k/v + o_h (f32)
             + 2 * 4 * S * S                     # scores + probabilities (f32)
             + 4 * S * D)                        # f32 output before final cast
    avail = max(budget_bytes - weight_bytes, per_b)
    bt = max(1, min(B, avail // per_b))
    if num_cores >= 2 and B >= 2:
        bt = min(bt, max(1, B // num_cores))     # keep >= num_cores grid steps
    while bt > 1 and B % bt:
        bt -= 1
    return int(bt)


# --------------------------------------------------------------------------
# Wrapper
# --------------------------------------------------------------------------
def self_attention_token_mixing(x, params, *, nhead, eps=1e-5,
                                compute_dtype=jnp.bfloat16, batch_tile=None):
    """x: (B, S, D) float32.  params: dict of module parameters (torch layout)."""
    B, S, D = x.shape
    assert D % nhead == 0, "d_model must be divisible by nhead"
    hd = D // nhead
    scale = 1.0 / math.sqrt(hd)
    cdt = jnp.dtype(compute_dtype)

    # Sublane-align the sequence axis so the flattened (Bt*S, D) slabs and the
    # (Bt, S, S) score tiles stay layout-friendly.  Padded keys are masked in
    # the kernel; padded query rows are sliced off below.
    s_pad = max(8, ((S + 7) // 8) * 8)
    x_in = jnp.pad(x, ((0, 0), (0, s_pad - S), (0, 0))) if s_pad != S else x

    # Pre-fused weights (trace time, zero runtime cost).
    w_in = params["in_proj_weight"]            # (3D, D) rows: [q | k | v]
    b_in = params["in_proj_bias"]              # (3D,)
    q_scale = jnp.concatenate([jnp.full((D,), scale, jnp.float32),
                               jnp.ones((2 * D,), jnp.float32)])
    w_qkv = (w_in.T.astype(jnp.float32) * q_scale[None, :]).astype(cdt)  # (D, 3D)
    b_qkv = (b_in.astype(jnp.float32) * q_scale).reshape(1, 3 * D)
    w_o = params["out_proj_weight"].T.astype(cdt)                         # (D, D)
    b_o = params["out_proj_bias"].reshape(1, D).astype(jnp.float32)
    gamma = params["ln_weight"].reshape(1, D).astype(jnp.float32)
    beta = params["ln_bias"].reshape(1, D).astype(jnp.float32)

    # Chip-aware VMEM sizing (v5e/v6e: 128 MiB physical, v7x: 64 MiB).
    cap = _vmem_capacity_bytes()
    vmem_limit = int(0.75 * cap)
    budget = int(0.60 * cap)
    num_cores = _num_tensorcores()

    bt = (batch_tile if batch_tile is not None else
          _pick_batch_tile(B, s_pad, D, nhead, compute_itemsize=cdt.itemsize,
                           budget_bytes=budget, num_cores=num_cores))
    assert B % bt == 0, "batch tile must divide the batch"

    # exp in bf16 only where the EUP supports it (v6e/v7x) and we're already
    # on the bf16 MXU path; row-max and denominator stay f32 in the kernel.
    exp_dtype = cdt if (cdt == jnp.dtype(jnp.bfloat16) and _supports_bf16_eup()) \
        else jnp.float32

    kernel = partial(_sa_token_mixing_kernel, nhead=nhead, eps=eps, s_valid=S,
                     compute_dtype=cdt, exp_dtype=exp_dtype)

    const2 = lambda b: (0, 0)

    out = pl.pallas_call(
        kernel,
        out_shape=jax.ShapeDtypeStruct((B, s_pad, D), x.dtype),
        grid_spec=pltpu.PrefetchScalarGridSpec(
            num_scalar_prefetch=0,
            grid=(B // bt,),
            in_specs=[
                pl.BlockSpec((bt, s_pad, D), lambda b: (b, 0, 0)),   # x
                pl.BlockSpec((1, D), const2),                        # LN gamma
                pl.BlockSpec((1, D), const2),                        # LN beta
                pl.BlockSpec((D, 3 * D), const2),                    # W_qkv (Q cols scaled)
                pl.BlockSpec((1, 3 * D), const2),                    # b_qkv (Q scaled)
                pl.BlockSpec((D, D), const2),                        # W_out^T
                pl.BlockSpec((1, D), const2),                        # b_out
            ],
            out_specs=pl.BlockSpec((bt, s_pad, D), lambda b: (b, 0, 0)),
            scratch_shapes=[pltpu.VMEM((bt * s_pad, D), cdt)],       # head staging slab
        ),
        compiler_params=pltpu.CompilerParams(
            dimension_semantics=("parallel",),
            vmem_limit_bytes=vmem_limit),
    )(x_in, gamma, beta, w_qkv, b_qkv, w_o, b_o)

    return out if s_pad == S else out[:, :S, :]


# --------------------------------------------------------------------------
# Pure-JAX reference & synthetic params
# --------------------------------------------------------------------------
def _reference(x, params, *, nhead, eps=1e-5):
    """Pure-JAX reference mirroring torch.nn.MultiheadAttention (eval mode)."""
    B, S, D = x.shape
    hd = D // nhead
    mean = jnp.mean(x, axis=-1, keepdims=True)
    var = jnp.mean((x - mean) ** 2, axis=-1, keepdims=True)
    xn = (x - mean) / jnp.sqrt(var + eps)
    xn = xn * params["ln_weight"] + params["ln_bias"]
    qkv = xn @ params["in_proj_weight"].T + params["in_proj_bias"]
    q, k, v = jnp.split(qkv, 3, axis=-1)

    def heads(t):
        return t.reshape(B, S, nhead, hd).transpose(0, 2, 1, 3)   # (B,H,S,hd)

    qh, kh, vh = heads(q), heads(k), heads(v)
    s = jnp.einsum("bhqd,bhkd->bhqk", qh / math.sqrt(hd), kh)
    p = jax.nn.softmax(s, axis=-1)
    o = jnp.einsum("bhqk,bhkd->bhqd", p, vh)
    o = o.transpose(0, 2, 1, 3).reshape(B, S, D)
    return o @ params["out_proj_weight"].T + params["out_proj_bias"]


def init_params(key, d_model):
    """Deterministic synthetic init mirroring the PyTorch module's shapes."""
    k1, k2, _ = jax.random.split(key, 3)
    bound_in = math.sqrt(6.0 / (4 * d_model))     # xavier_uniform for in_proj
    bound_out = 1.0 / math.sqrt(d_model)
    return {
        "ln_weight": jnp.ones((d_model,), jnp.float32),
        "ln_bias": jnp.zeros((d_model,), jnp.float32),
        "in_proj_weight": jax.random.uniform(
            k1, (3 * d_model, d_model), jnp.float32, -bound_in, bound_in),
        "in_proj_bias": jnp.zeros((3 * d_model,), jnp.float32),
        "out_proj_weight": jax.random.uniform(
            k2, (d_model, d_model), jnp.float32, -bound_out, bound_out),
        "out_proj_bias": jnp.zeros((d_model,), jnp.float32),
    }


if __name__ == "__main__":
    B, S, D, NHEAD = 2, 8, 32, 4
    key = jax.random.PRNGKey(0)
    kx, kx2, kx3, kp = jax.random.split(key, 4)
    x = jax.random.normal(kx, (B, S, D), jnp.float32)
    params = init_params(kp, D)
    ref = _reference(x, params, nhead=NHEAD)

    # Strict f32 MXU path with exact softmax normalization.
    out_f32 = jax.block_until_ready(
        self_attention_token_mixing(x, params, nhead=NHEAD,
                                    compute_dtype=jnp.float32))
    assert out_f32.shape == (B, S, D)
    assert jnp.allclose(out_f32, ref, atol=2e-3, rtol=2e-3), "f32 path mismatch"

    # Default bf16 MXU path (v6e/v7x fast path): looser tolerance.
    out_bf16 = jax.block_until_ready(
        self_attention_token_mixing(x, params, nhead=NHEAD))
    assert out_bf16.shape == (B, S, D)
    assert jnp.allclose(out_bf16, ref, atol=3e-2, rtol=3e-2), "bf16 path mismatch"

    # Larger batch exercises the batch-tile picker / multi-step grid.
    B2 = 8
    x2 = jax.random.normal(kx2, (B2, S, D), jnp.float32)
    ref2 = _reference(x2, params, nhead=NHEAD)
    out2 = jax.block_until_ready(
        self_attention_token_mixing(x2, params, nhead=NHEAD))
    assert out2.shape == (B2, S, D)
    assert jnp.allclose(out2, ref2, atol=3e-2, rtol=3e-2), "batched-tile mismatch"

    # Sequence length not a multiple of 8 exercises the pad + key-mask path.
    S3 = 10
    x3 = jax.random.normal(kx3, (B, S3, D), jnp.float32)
    ref3 = _reference(x3, params, nhead=NHEAD)
    out3 = jax.block_until_ready(
        self_attention_token_mixing(x3, params, nhead=NHEAD))
    assert out3.shape == (B, S3, D)
    assert jnp.allclose(out3, ref3, atol=3e-2, rtol=3e-2), "padded-seq mismatch"

    print("KERNEL_OK")
</pallas_src>

<mosaic_0001>
module attributes {stable_mosaic.version = 11 : i64} {
  func.func @_sa_token_mixing_kernel(%arg0: i32, %arg1: memref<2x8x32xf32, #tpu.memory_space<vmem>>, %arg2: memref<1x32xf32, #tpu.memory_space<vmem>>, %arg3: memref<1x32xf32, #tpu.memory_space<vmem>>, %arg4: memref<32x96xf32, #tpu.memory_space<vmem>>, %arg5: memref<1x96xf32, #tpu.memory_space<vmem>>, %arg6: memref<32x32xf32, #tpu.memory_space<vmem>>, %arg7: memref<1x32xf32, #tpu.memory_space<vmem>>, %arg8: memref<2x8x32xf32, #tpu.memory_space<vmem>>, %arg9: memref<16x32xf32, #tpu.memory_space<vmem>>) attributes {dimension_semantics = [#tpu.dimension_semantics<parallel>], iteration_bounds = array<i64: 1>, scalar_prefetch = 0 : i64, scratch_operands = 1 : i64, tpu.core_type = #tpu.core_type<tc>, window_params = [{transform_indices = @transform_0, window_bounds = array<i64: 2, 8, 32>}, {pipeline_mode = #tpu.pipeline_mode<synchronous>, transform_indices = @transform_1, window_bounds = array<i64: 1, 32>}, {pipeline_mode = #tpu.pipeline_mode<synchronous>, transform_indices = @transform_2, window_bounds = array<i64: 1, 32>}, {pipeline_mode = #tpu.pipeline_mode<synchronous>, transform_indices = @transform_3, window_bounds = array<i64: 32, 96>}, {pipeline_mode = #tpu.pipeline_mode<synchronous>, transform_indices = @transform_4, window_bounds = array<i64: 1, 96>}, {pipeline_mode = #tpu.pipeline_mode<synchronous>, transform_indices = @transform_5, window_bounds = array<i64: 32, 32>}, {pipeline_mode = #tpu.pipeline_mode<synchronous>, transform_indices = @transform_6, window_bounds = array<i64: 1, 32>}, {transform_indices = @transform_7, window_bounds = array<i64: 2, 8, 32>}]} {
    %c0 = arith.constant 0 : index
    %c0_0 = arith.constant 0 : index
    %c0_1 = arith.constant 0 : index
    %0 = vector.load %arg1[%c0, %c0_0, %c0_1] : memref<2x8x32xf32, #tpu.memory_space<vmem>>, vector<2x8x32xf32>
    %1 = vector.shape_cast %0 : vector<2x8x32xf32> to vector<16x32xf32>
    %cst = arith.constant dense<0.000000e+00> : vector<16xf32>
    %2 = vector.multi_reduction <add>, %1, %cst [1] : vector<16x32xf32> to vector<16xf32>
    %3 = vector.shape_cast %2 : vector<16xf32> to vector<16x1xf32>
    %cst_2 = arith.constant 3.200000e+01 : f32
    %4 = vector.broadcast %cst_2 : f32 to vector<16x1xf32>
    %5 = arith.divf %3, %4 : vector<16x1xf32>
    %6 = vector.broadcast %5 : vector<16x1xf32> to vector<16x32xf32>
    %7 = arith.subf %1, %6 : vector<16x32xf32>
    %8 = arith.mulf %7, %7 : vector<16x32xf32>
    %cst_3 = arith.constant dense<0.000000e+00> : vector<16xf32>
    %9 = vector.multi_reduction <add>, %8, %cst_3 [1] : vector<16x32xf32> to vector<16xf32>
    %10 = vector.shape_cast %9 : vector<16xf32> to vector<16x1xf32>
    %cst_4 = arith.constant 3.200000e+01 : f32
    %11 = vector.broadcast %cst_4 : f32 to vector<16x1xf32>
    %12 = arith.divf %10, %11 : vector<16x1xf32>
    %cst_5 = arith.constant 9.99999974E-6 : f32
    %13 = vector.broadcast %cst_5 : f32 to vector<16x1xf32>
    %14 = arith.addf %12, %13 : vector<16x1xf32>
    %15 = math.rsqrt %14 : vector<16x1xf32>
    %16 = vector.broadcast %15 : vector<16x1xf32> to vector<16x32xf32>
    %17 = arith.mulf %7, %16 : vector<16x32xf32>
    %c0_6 = arith.constant 0 : index
    %c0_7 = arith.constant 0 : index
    %18 = vector.load %arg2[%c0_6, %c0_7] : memref<1x32xf32, #tpu.memory_space<vmem>>, vector<1x32xf32>
    %19 = vector.broadcast %18 : vector<1x32xf32> to vector<16x32xf32>
    %20 = arith.mulf %17, %19 : vector<16x32xf32>
    %c0_8 = arith.constant 0 : index
    %c0_9 = arith.constant 0 : index
    %21 = vector.load %arg3[%c0_8, %c0_9] : memref<1x32xf32, #tpu.memory_space<vmem>>, vector<1x32xf32>
    %22 = vector.broadcast %21 : vector<1x32xf32> to vector<16x32xf32>
    %23 = arith.addf %20, %22 : vector<16x32xf32>
    %c0_10 = arith.constant 0 : index
    %c0_11 = arith.constant 0 : index
    %24 = vector.load %arg4[%c0_10, %c0_11] : memref<32x96xf32, #tpu.memory_space<vmem>>, vector<32x96xf32>
    %cst_12 = arith.constant dense<0.000000e+00> : vector<16x96xf32>
    %25 = tpu.matmul %23, %24, %cst_12 {dimension_numbers = #tpu.dot_dimension_numbers<[1], [0], [0], [1], [0, 0, 1, 1], [], []>} : vector<16x32xf32>, vector<32x96xf32>, vector<16x96xf32> -> vector<16x96xf32>
    %c0_13 = arith.constant 0 : index
    %c0_14 = arith.constant 0 : index
    %26 = vector.load %arg5[%c0_13, %c0_14] : memref<1x96xf32, #tpu.memory_space<vmem>>, vector<1x96xf32>
    %27 = vector.broadcast %26 : vector<1x96xf32> to vector<16x96xf32>
    %28 = arith.addf %25, %27 : vector<16x96xf32>
    %29 = vector.extract_strided_slice %28 {offsets = [0, 0], sizes = [16, 8], strides = [1, 1]} : vector<16x96xf32> to vector<16x8xf32>
    %30 = vector.shape_cast %29 : vector<16x8xf32> to vector<2x8x8xf32>
    %31 = vector.extract_strided_slice %28 {offsets = [0, 32], sizes = [16, 8], strides = [1, 1]} : vector<16x96xf32> to vector<16x8xf32>
    %32 = vector.shape_cast %31 : vector<16x8xf32> to vector<2x8x8xf32>
    %33 = vector.extract_strided_slice %28 {offsets = [0, 64], sizes = [16, 8], strides = [1, 1]} : vector<16x96xf32> to vector<16x8xf32>
    %34 = vector.shape_cast %33 : vector<16x8xf32> to vector<2x8x8xf32>
    "tpu.trace_start"() <{level = 10 : i32, message = "bqd,bkd->bqk"}> : () -> ()
    %cst_15 = arith.constant dense<0.000000e+00> : vector<2x8x8xf32>
    %35 = tpu.matmul %30, %32, %cst_15 {dimension_numbers = #tpu.dot_dimension_numbers<[2], [2], [1], [1], [0, 0, 0, 1, 1, 1], [0], [0]>} : vector<2x8x8xf32>, vector<2x8x8xf32>, vector<2x8x8xf32> -> vector<2x8x8xf32>
    "tpu.trace_stop"() : () -> ()
    %cst_16 = arith.constant dense<0xFF800000> : vector<2x8xf32>
    %36 = vector.multi_reduction <maximumf>, %35, %cst_16 [2] : vector<2x8x8xf32> to vector<2x8xf32>
    %37 = vector.shape_cast %36 : vector<2x8xf32> to vector<2x8x1xf32>
    %38 = vector.broadcast %37 : vector<2x8x1xf32> to vector<2x8x8xf32>
    %39 = arith.subf %35, %38 : vector<2x8x8xf32>
    %40 = math.exp %39 : vector<2x8x8xf32>
    %cst_17 = arith.constant dense<0.000000e+00> : vector<2x8xf32>
    %41 = vector.multi_reduction <add>, %40, %cst_17 [2] : vector<2x8x8xf32> to vector<2x8xf32>
    %42 = vector.shape_cast %41 : vector<2x8xf32> to vector<2x8x1xf32>
    %43 = vector.broadcast %42 : vector<2x8x1xf32> to vector<2x8x8xf32>
    %44 = arith.divf %40, %43 : vector<2x8x8xf32>
    "tpu.trace_start"() <{level = 10 : i32, message = "bqk,bkd->bqd"}> : () -> ()
    %cst_18 = arith.constant dense<0.000000e+00> : vector<2x8x8xf32>
    %45 = tpu.matmul %44, %34, %cst_18 {dimension_numbers = #tpu.dot_dimension_numbers<[2], [1], [1], [2], [0, 0, 0, 1, 1, 2], [0], [0]>} : vector<2x8x8xf32>, vector<2x8x8xf32>, vector<2x8x8xf32> -> vector<2x8x8xf32>
    "tpu.trace_stop"() : () -> ()
    %46 = vector.shape_cast %45 : vector<2x8x8xf32> to vector<16x8xf32>
    %c0_19 = arith.constant 0 : index
    %c0_20 = arith.constant 0 : index
    %47 = vector.load %arg9[%c0_19, %c0_20] : memref<16x32xf32, #tpu.memory_space<vmem>>, vector<16x8xf32>
    tpu.vector_store %arg9[%c0_19, %c0_20], %46 {strides = array<i32>} : memref<16x32xf32, #tpu.memory_space<vmem>>, vector<16x8xf32>,
    %48 = vector.extract_strided_slice %28 {offsets = [0, 8], sizes = [16, 8], strides = [1, 1]} : vector<16x96xf32> to vector<16x8xf32>
    %49 = vector.shape_cast %48 : vector<16x8xf32> to vector<2x8x8xf32>
    %50 = vector.extract_strided_slice %28 {offsets = [0, 40], sizes = [16, 8], strides = [1, 1]} : vector<16x96xf32> to vector<16x8xf32>
    %51 = vector.shape_cast %50 : vector<16x8xf32> to vector<2x8x8xf32>
    %52 = vector.extract_strided_slice %28 {offsets = [0, 72], sizes = [16, 8], strides = [1, 1]} : vector<16x96xf32> to vector<16x8xf32>
    %53 = vector.shape_cast %52 : vector<16x8xf32> to vector<2x8x8xf32>
    "tpu.trace_start"() <{level = 10 : i32, message = "bqd,bkd->bqk"}> : () -> ()
    %cst_21 = arith.constant dense<0.000000e+00> : vector<2x8x8xf32>
    %54 = tpu.matmul %49, %51, %cst_21 {dimension_numbers = #tpu.dot_dimension_numbers<[2], [2], [1], [1], [0, 0, 0, 1, 1, 1], [0], [0]>} : vector<2x8x8xf32>, vector<2x8x8xf32>, vector<2x8x8xf32> -> vector<2x8x8xf32>
    "tpu.trace_stop"() : () -> ()
    %cst_22 = arith.constant dense<0xFF800000> : vector<2x8xf32>
    %55 = vector.multi_reduction <maximumf>, %54, %cst_22 [2] : vector<2x8x8xf32> to vector<2x8xf32>
    %56 = vector.shape_cast %55 : vector<2x8xf32> to vector<2x8x1xf32>
    %57 = vector.broadcast %56 : vector<2x8x1xf32> to vector<2x8x8xf32>
    %58 = arith.subf %54, %57 : vector<2x8x8xf32>
    %59 = math.exp %58 : vector<2x8x8xf32>
    %cst_23 = arith.constant dense<0.000000e+00> : vector<2x8xf32>
    %60 = vector.multi_reduction <add>, %59, %cst_23 [2] : vector<2x8x8xf32> to vector<2x8xf32>
    %61 = vector.shape_cast %60 : vector<2x8xf32> to vector<2x8x1xf32>
    %62 = vector.broadcast %61 : vector<2x8x1xf32> to vector<2x8x8xf32>
    %63 = arith.divf %59, %62 : vector<2x8x8xf32>
    "tpu.trace_start"() <{level = 10 : i32, message = "bqk,bkd->bqd"}> : () -> ()
    %cst_24 = arith.constant dense<0.000000e+00> : vector<2x8x8xf32>
    %64 = tpu.matmul %63, %53, %cst_24 {dimension_numbers = #tpu.dot_dimension_numbers<[2], [1], [1], [2], [0, 0, 0, 1, 1, 2], [0], [0]>} : vector<2x8x8xf32>, vector<2x8x8xf32>, vector<2x8x8xf32> -> vector<2x8x8xf32>
    "tpu.trace_stop"() : () -> ()
    %65 = vector.shape_cast %64 : vector<2x8x8xf32> to vector<16x8xf32>
    %c0_25 = arith.constant 0 : index
    %c8 = arith.constant 8 : index
    %66 = vector.load %arg9[%c0_25, %c8] : memref<16x32xf32, #tpu.memory_space<vmem>>, vector<16x8xf32>
    tpu.vector_store %arg9[%c0_25, %c8], %65 {strides = array<i32>} : memref<16x32xf32, #tpu.memory_space<vmem>>, vector<16x8xf32>,
    %67 = vector.extract_strided_slice %28 {offsets = [0, 16], sizes = [16, 8], strides = [1, 1]} : vector<16x96xf32> to vector<16x8xf32>
    %68 = vector.shape_cast %67 : vector<16x8xf32> to vector<2x8x8xf32>
    %69 = vector.extract_strided_slice %28 {offsets = [0, 48], sizes = [16, 8], strides = [1, 1]} : vector<16x96xf32> to vector<16x8xf32>
    %70 = vector.shape_cast %69 : vector<16x8xf32> to vector<2x8x8xf32>
    %71 = vector.extract_strided_slice %28 {offsets = [0, 80], sizes = [16, 8], strides = [1, 1]} : vector<16x96xf32> to vector<16x8xf32>
    %72 = vector.shape_cast %71 : vector<16x8xf32> to vector<2x8x8xf32>
    "tpu.trace_start"() <{level = 10 : i32, message = "bqd,bkd->bqk"}> : () -> ()
    %cst_26 = arith.constant dense<0.000000e+00> : vector<2x8x8xf32>
    %73 = tpu.matmul %68, %70, %cst_26 {dimension_numbers = #tpu.dot_dimension_numbers<[2], [2], [1], [1], [0, 0, 0, 1, 1, 1], [0], [0]>} : vector<2x8x8xf32>, vector<2x8x8xf32>, vector<2x8x8xf32> -> vector<2x8x8xf32>
    "tpu.trace_stop"() : () -> ()
    %cst_27 = arith.constant dense<0xFF800000> : vector<2x8xf32>
    %74 = vector.multi_reduction <maximumf>, %73, %cst_27 [2] : vector<2x8x8xf32> to vector<2x8xf32>
    %75 = vector.shape_cast %74 : vector<2x8xf32> to vector<2x8x1xf32>
    %76 = vector.broadcast %75 : vector<2x8x1xf32> to vector<2x8x8xf32>
    %77 = arith.subf %73, %76 : vector<2x8x8xf32>
    %78 = math.exp %77 : vector<2x8x8xf32>
    %cst_28 = arith.constant dense<0.000000e+00> : vector<2x8xf32>
    %79 = vector.multi_reduction <add>, %78, %cst_28 [2] : vector<2x8x8xf32> to vector<2x8xf32>
    %80 = vector.shape_cast %79 : vector<2x8xf32> to vector<2x8x1xf32>
    %81 = vector.broadcast %80 : vector<2x8x1xf32> to vector<2x8x8xf32>
    %82 = arith.divf %78, %81 : vector<2x8x8xf32>
    "tpu.trace_start"() <{level = 10 : i32, message = "bqk,bkd->bqd"}> : () -> ()
    %cst_29 = arith.constant dense<0.000000e+00> : vector<2x8x8xf32>
    %83 = tpu.matmul %82, %72, %cst_29 {dimension_numbers = #tpu.dot_dimension_numbers<[2], [1], [1], [2], [0, 0, 0, 1, 1, 2], [0], [0]>} : vector<2x8x8xf32>, vector<2x8x8xf32>, vector<2x8x8xf32> -> vector<2x8x8xf32>
    "tpu.trace_stop"() : () -> ()
    %84 = vector.shape_cast %83 : vector<2x8x8xf32> to vector<16x8xf32>
    %c0_30 = arith.constant 0 : index
    %c16 = arith.constant 16 : index
    %85 = vector.load %arg9[%c0_30, %c16] : memref<16x32xf32, #tpu.memory_space<vmem>>, vector<16x8xf32>
    tpu.vector_store %arg9[%c0_30, %c16], %84 {strides = array<i32>} : memref<16x32xf32, #tpu.memory_space<vmem>>, vector<16x8xf32>,
    %86 = vector.extract_strided_slice %28 {offsets = [0, 24], sizes = [16, 8], strides = [1, 1]} : vector<16x96xf32> to vector<16x8xf32>
    %87 = vector.shape_cast %86 : vector<16x8xf32> to vector<2x8x8xf32>
    %88 = vector.extract_strided_slice %28 {offsets = [0, 56], sizes = [16, 8], strides = [1, 1]} : vector<16x96xf32> to vector<16x8xf32>
    %89 = vector.shape_cast %88 : vector<16x8xf32> to vector<2x8x8xf32>
    %90 = vector.extract_strided_slice %28 {offsets = [0, 88], sizes = [16, 8], strides = [1, 1]} : vector<16x96xf32> to vector<16x8xf32>
    %91 = vector.shape_cast %90 : vector<16x8xf32> to vector<2x8x8xf32>
    "tpu.trace_start"() <{level = 10 : i32, message = "bqd,bkd->bqk"}> : () -> ()
    %cst_31 = arith.constant dense<0.000000e+00> : vector<2x8x8xf32>
    %92 = tpu.matmul %87, %89, %cst_31 {dimension_numbers = #tpu.dot_dimension_numbers<[2], [2], [1], [1], [0, 0, 0, 1, 1, 1], [0], [0]>} : vector<2x8x8xf32>, vector<2x8x8xf32>, vector<2x8x8xf32> -> vector<2x8x8xf32>
    "tpu.trace_stop"() : () -> ()
    %cst_32 = arith.constant dense<0xFF800000> : vector<2x8xf32>
    %93 = vector.multi_reduction <maximumf>, %92, %cst_32 [2] : vector<2x8x8xf32> to vector<2x8xf32>
    %94 = vector.shape_cast %93 : vector<2x8xf32> to vector<2x8x1xf32>
    %95 = vector.broadcast %94 : vector<2x8x1xf32> to vector<2x8x8xf32>
    %96 = arith.subf %92, %95 : vector<2x8x8xf32>
    %97 = math.exp %96 : vector<2x8x8xf32>
    %cst_33 = arith.constant dense<0.000000e+00> : vector<2x8xf32>
    %98 = vector.multi_reduction <add>, %97, %cst_33 [2] : vector<2x8x8xf32> to vector<2x8xf32>
    %99 = vector.shape_cast %98 : vector<2x8xf32> to vector<2x8x1xf32>
    %100 = vector.broadcast %99 : vector<2x8x1xf32> to vector<2x8x8xf32>
    %101 = arith.divf %97, %100 : vector<2x8x8xf32>
    "tpu.trace_start"() <{level = 10 : i32, message = "bqk,bkd->bqd"}> : () -> ()
    %cst_34 = arith.constant dense<0.000000e+00> : vector<2x8x8xf32>
    %102 = tpu.matmul %101, %91, %cst_34 {dimension_numbers = #tpu.dot_dimension_numbers<[2], [1], [1], [2], [0, 0, 0, 1, 1, 2], [0], [0]>} : vector<2x8x8xf32>, vector<2x8x8xf32>, vector<2x8x8xf32> -> vector<2x8x8xf32>
    "tpu.trace_stop"() : () -> ()
    %103 = vector.shape_cast %102 : vector<2x8x8xf32> to vector<16x8xf32>
    %c0_35 = arith.constant 0 : index
    %c24 = arith.constant 24 : index
    %104 = vector.load %arg9[%c0_35, %c24] : memref<16x32xf32, #tpu.memory_space<vmem>>, vector<16x8xf32>
    tpu.vector_store %arg9[%c0_35, %c24], %103 {strides = array<i32>} : memref<16x32xf32, #tpu.memory_space<vmem>>, vector<16x8xf32>,
    %c0_36 = arith.constant 0 : index
    %c0_37 = arith.constant 0 : index
    %105 = vector.load %arg9[%c0_36, %c0_37] : memref<16x32xf32, #tpu.memory_space<vmem>>, vector<16x32xf32>
    %c0_38 = arith.constant 0 : index
    %c0_39 = arith.constant 0 : index
    %106 = vector.load %arg6[%c0_38, %c0_39] : memref<32x32xf32, #tpu.memory_space<vmem>>, vector<32x32xf32>
    %cst_40 = arith.constant dense<0.000000e+00> : vector<16x32xf32>
    %107 = tpu.matmul %105, %106, %cst_40 {dimension_numbers = #tpu.dot_dimension_numbers<[1], [0], [0], [1], [0, 0, 1, 1], [], []>} : vector<16x32xf32>, vector<32x32xf32>, vector<16x32xf32> -> vector<16x32xf32>
    %c0_41 = arith.constant 0 : index
    %c0_42 = arith.constant 0 : index
    %108 = vector.load %arg7[%c0_41, %c0_42] : memref<1x32xf32, #tpu.memory_space<vmem>>, vector<1x32xf32>
    %109 = vector.broadcast %108 : vector<1x32xf32> to vector<16x32xf32>
    %110 = arith.addf %107, %109 : vector<16x32xf32>
    %111 = vector.shape_cast %110 : vector<16x32xf32> to vector<2x8x32xf32>
    %c0_43 = arith.constant 0 : index
    %c0_44 = arith.constant 0 : index
    %c0_45 = arith.constant 0 : index
    %112 = vector.load %arg8[%c0_43, %c0_44, %c0_45] : memref<2x8x32xf32, #tpu.memory_space<vmem>>, vector<2x8x32xf32>
    tpu.vector_store %arg8[%c0_43, %c0_44, %c0_45], %111 {strides = array<i32>} : memref<2x8x32xf32, #tpu.memory_space<vmem>>, vector<2x8x32xf32>,
    return
  }
  func.func @transform_0(%arg0: i32) -> (i32, i32, i32) {
    %c0_i32 = arith.constant 0 : i32
    %c0_i32_0 = arith.constant 0 : i32
    %c0_i32_1 = arith.constant 0 : i32
    return %arg0, %c0_i32, %c0_i32_0 : i32, i32, i32
  }
  func.func @transform_1(%arg0: i32) -> (i32, i32) {
    %c0_i32 = arith.constant 0 : i32
    %c0_i32_0 = arith.constant 0 : i32
    %c0_i32_1 = arith.constant 0 : i32
    return %c0_i32, %c0_i32_0 : i32, i32
  }
  func.func @transform_2(%arg0: i32) -> (i32, i32) {
    %c0_i32 = arith.constant 0 : i32
    %c0_i32_0 = arith.constant 0 : i32
    %c0_i32_1 = arith.constant 0 : i32
    return %c0_i32, %c0_i32_0 : i32, i32
  }
  func.func @transform_3(%arg0: i32) -> (i32, i32) {
    %c0_i32 = arith.constant 0 : i32
    %c0_i32_0 = arith.constant 0 : i32
    %c0_i32_1 = arith.constant 0 : i32
    return %c0_i32, %c0_i32_0 : i32, i32
  }
  func.func @transform_4(%arg0: i32) -> (i32, i32) {
    %c0_i32 = arith.constant 0 : i32
    %c0_i32_0 = arith.constant 0 : i32
    %c0_i32_1 = arith.constant 0 : i32
    return %c0_i32, %c0_i32_0 : i32, i32
  }
  func.func @transform_5(%arg0: i32) -> (i32, i32) {
    %c0_i32 = arith.constant 0 : i32
    %c0_i32_0 = arith.constant 0 : i32
    %c0_i32_1 = arith.constant 0 : i32
    return %c0_i32, %c0_i32_0 : i32, i32
  }
  func.func @transform_6(%arg0: i32) -> (i32, i32) {
    %c0_i32 = arith.constant 0 : i32
    %c0_i32_0 = arith.constant 0 : i32
    %c0_i32_1 = arith.constant 0 : i32
    return %c0_i32, %c0_i32_0 : i32, i32
  }
  func.func @transform_7(%arg0: i32) -> (i32, i32, i32) {
    %c0_i32 = arith.constant 0 : i32
    %c0_i32_0 = arith.constant 0 : i32
    %c0_i32_1 = arith.constant 0 : i32
    return %arg0, %c0_i32, %c0_i32_0 : i32, i32, i32
  }
}

</mosaic_0001>

<bundles_post_ra>
// kernel: tpu_custom_call.1
= control target key start
LH: loop header
LB: loop body
LE: loop exit
PB: predicated region body
PF: predicated region fallthrough
CT: control target
= control target key end

     0   :  { %12 = vsyncpa [#allocation4], 0  ;;  %s2232_s0 = inlined_call_operand.hbm [shape: f32[2,8,32], index: 0, kind: input, shape index: {}]   ;;  %s2233_s1 = inlined_call_operand.vmem [shape: f32[1,32], index: 1, kind: input, shape index: {}]   ;;  %s2234_s2 = inlined_call_operand.vmem [shape: f32[1,32], index: 2, kind: input, shape index: {}]   ;;  %s2235_s3 = inlined_call_operand.hbm [shape: f32[32,96], index: 3, kind: input, shape index: {}]   ;;  %s2236_s4 = inlined_call_operand.vmem [shape: f32[1,96], index: 4, kind: input, shape index: {}]   ;;  %s2237_s5 = inlined_call_operand.hbm [shape: f32[32,32], index: 5, kind: input, shape index: {}]   ;;  %s2238_s6 = inlined_call_operand.vmem [shape: f32[1,32], index: 6, kind: input, shape index: {}]   ;;  %s2239_s7 = inlined_call_operand.hbm [shape: f32[2,8,32], index: 7, kind: output, shape index: {}]  }
   0x1   :  { %13 = vsyncpa [#allocation7], 0 }
   0x2   :  { %14 = vsyncpa [#allocation5], 0  ;;  %s1997_s24 = smov [#allocation6]   ;;  %s1998_s26 = smov [#allocation3]  }
   0x3   :  { %s36_s25 = sshll.u32 %s1997_s24, 4  ;;  %s20_s27 = sshll.u32 %s1998_s26, 4  ;;  %s37_s25 = int_to_ptr.vmem [resolvable:$true] %s36_s25  ;;  %s21_s27 = int_to_ptr.vmem [resolvable:$true] %s20_s27 }
   0x4   :  { %s1919_s28 = scalar_lea.vmem %s37_s25, 512  ;;  %p1924_p1 = scmp.lt.s32.totalorder %s37_s25, %s37_s25 }
   0x5   :  { %p1920_p0 = scmp.ne.s32.totalorder %s37_s25, %s1919_s28  ;;  %p1925_p2 = scmp.lt.s32.totalorder %s1919_s28, %s1919_s28 }
   0x7   :  { %p1926_p3 = por %p1925_p2, %p1924_p1 }
   0x9   :  { %p1927_p4 = pnand %p1926_p3, %p1920_p0 }
   0xb   :  { %1930 = shalt.err (!%p1927_p4)
}
   0xc   :  { %s1999_s29 = smov 128   ;;  %s2000_s30 = smov 8  }
   0xd   :  { %42 = dma.hbm_to_vmem [thread:$0]  %s2235_s3, 512, %s37_s25, [#allocation7], %s1999_s29, %s1999_s29, %s2000_s30  }
   0xe   :  { %s1939_s10 = scalar_lea.vmem %s21_s27, 256  ;;  %p1944_p6 = scmp.lt.s32.totalorder %s21_s27, %s21_s27 }
   0xf   :  { %p1940_p5 = scmp.ne.s32.totalorder %s21_s27, %s1939_s10  ;;  %p1945_p7 = scmp.lt.s32.totalorder %s1939_s10, %s1939_s10 }
  0x11   :  { %p1946_p8 = por %p1945_p7, %p1944_p6 }
  0x13   :  { %p1947_p9 = pnand %p1946_p8, %p1940_p5 }
  0x15   :  { %1950 = shalt.err (!%p1947_p9)
}
  0x16   :  { %26 = dma.hbm_to_vmem [thread:$0]  %s2232_s0, 256, %s21_s27, [#allocation4], %s1999_s29, %s1999_s29, %s2000_s30  }
  0x17   :  { %s2001_s13 = smov [#allocation8]  }
  0x18   :  { %s50_s14 = sshll.u32 %s2001_s13, 4  ;;  %s51_s14 = int_to_ptr.vmem [resolvable:$true] %s50_s14 }
  0x19   :  { %s1959_s15 = scalar_lea.vmem %s51_s14, 512  ;;  %p1964_p11 = scmp.lt.s32.totalorder %s51_s14, %s51_s14 }
  0x1a   :  { %p1960_p10 = scmp.ne.s32.totalorder %s51_s14, %s1959_s15  ;;  %p1965_p12 = scmp.lt.s32.totalorder %s1959_s15, %s1959_s15 }
  0x1c   :  { %p1966_p13 = por %p1965_p12, %p1964_p11 }
  0x1e   :  { %p1967_p0 = pnand %p1966_p13, %p1960_p10 }
  0x20   :  { %1970 = shalt.err (!%p1967_p0)
}
  0x21   :  { %56 = dma.hbm_to_vmem [thread:$0]  %s2237_s5, 512, %s51_s14, [#allocation7], %s1999_s29, %s1999_s29, %s2000_s30  }
  0x22   :  { %1991 = dma.done.wait [#allocation4], 256  }
  0x23   :  { %1992 = vsyncadd [#allocation4], 4294967040 }
  0x24   :  { %1993 = dma.done.wait [#allocation7], 1024  }
  0x25   :  { %1994 = vsyncadd [#allocation7], 4294966272  ;;  %vm70_vm0 = vcmask 261120   ;;  %v68_v0 = vld [vmem:[#allocation3] sm:$0xff]  ;;  %v69_v1 = vld [vmem:[#allocation3 + $0x8] sm:$0xff]  ;;  %v2002_v34 = vmov 0.0  }
  0x26   :  { %v71_v2 = vsel %vm70_vm0, %v68_v0, 0.0  ;;  %v74_v3 = vsel %vm70_vm0, %v69_v1, 0.0  ;;  %v119_v14 = vld [vmem:[#allocation6 + $0x18] sm:$0xff]  ;;  %v118_v15 = vld [vmem:[#allocation6 + $0x10] sm:$0xff]  ;;  %v117_v16 = vld [vmem:[#allocation6 + $0x8] sm:$0xff]  ;;  %1763 = vmatprep.subr.mxu1 %v2002_v34  ;;  %vm2003_vm1 = vmmov 0  }
  0x27   :  { %72 = vadd.xlane.f32.xlu0 %v71_v2  ;;  %1752 = vmatprep.subr.mxu0 %v119_v14  ;;  %v116_v17 = vld [vmem:[#allocation6] sm:$0xff]  ;;  %s2004_s19 = smov 96   ;;  %vm211_vm2 = vcmask 64512   ;;  %s2006_s20 = smov 88   ;;  %vm877_vm3 = vcmask 130112   ;;  %vm1218_vm4 = vcmask 195712  }
  0x28   :  { %1753 = vmatpush3.msra.mxu0 %v119_v14  ;;  %v1676_v25 = vld [vmem:[%s2233_s1] ss:$0 sm:$0xff]  ;;  %1765 = vmatprep.mubr.msk.f32.mxu1 %vm2003_vm1, %v2002_v34  ;;  %s2007_s21 = smov 120   ;;  %s2008_s22 = smov 56   ;;  %vm1559_vm5 = vcmask 261312  }
  0x29   :  { %1754 = vmatprep.subr.mxu0 %v118_v15  ;;  %v1677_v27 = vld [vmem:[%s2234_s2] ss:$0 sm:$0xff]  ;;  %s2009_s23 = smov 80   ;;  %s2010_s24 = smov 112  }
  0x2a   :  { %1755 = vmatpush3.msra.mxu0 %v118_v15  ;;  %v1678_v35 = vld [vmem:[%s2236_s4] ss:$0 sm:$0xff]  ;;  %s2005_s4 = smov 64   ;;  %s2011_s25 = smov 48  }
  0x2b   :  { %75 = vadd.xlane.f32.xlu0 %v74_v3  ;;  %1756 = vmatprep.subr.mxu0 %v117_v16  ;;  %s2012_s26 = smov 72   ;;  %s2013_s27 = smov 104  }
  0x2c   :  { %1757 = vmatpush3.msra.mxu0 %v117_v16  ;;  %s2014_s28 = smov 40   ;;  %s2015_s8 = smov 16  }
  0x2d   :  { %1758 = vmatprep.subr.mxu0 %v116_v17  ;;  %s2016_s9 = smov 24   ;;  %s2017_s12 = smov [#allocation9]  }
  0x2e   :  { %1759 = vmatpush3.msra.mxu0 %v116_v17  ;;  %s1663_s13 = sshll.u32 %s2017_s12, 4  ;;  %s1664_s13 = int_to_ptr.vmem [resolvable:$true] %s1663_s13 }
  0x2f   :  { %1783 = vmatprep.subr.mxu0 %v2002_v34  ;;  %s1971_s14 = scalar_lea.vmem %s1664_s13, 256  ;;  %p1976_p2 = scmp.lt.s32.totalorder %s1664_s13, %s1664_s13 }
  0x30   :  { %p1972_p1 = scmp.ne.s32.totalorder %s1664_s13, %s1971_s14  ;;  %p1977_p3 = scmp.lt.s32.totalorder %s1971_s14, %s1971_s14 }
  0x32   :  { %p1978_p4 = por %p1977_p3, %p1976_p2 }
  0x34   :  { %p1979_p5 = pnand %p1978_p4, %p1972_p1 }
  0xb0   :  { %v73_v4 = vpop.xlane.xlu0 %72 }
  0xb1   :  { %v78_v5 = vmul.f32 0.03125, %v73_v4 }
  0xb3   :  { %v80_v6 = vsub.f32 %v68_v0, %v78_v5 }
  0xb4   :  { %v76_v7 = vpop.xlane.xlu0 %75 }
  0xb5   :  { %v79_v8 = vmul.f32 0.03125, %v76_v7  ;;  %v82_v9 = vmul.f32 %v80_v6, %v80_v6 }
  0xb7   :  { %v81_v10 = vsub.f32 %v69_v1, %v79_v8  ;;  %v84_v11 = vsel %vm70_vm0, %v82_v9, 0.0 }
  0xb8   :  { %85 = vadd.xlane.f32.xlu1 %v84_v11 }
  0xb9   :  { %v83_v12 = vmul.f32 %v81_v10, %v81_v10 }
  0xbb   :  { %v87_v13 = vsel %vm70_vm0, %v83_v12, 0.0 }
  0xbc   :  { %88 = vadd.xlane.f32.xlu1 %v87_v13 }
 0x141   :  { %v86_v18 = vpop.xlane.xlu1 %85 }
 0x142   :  { %v90_v19 = vmul.f32 0.03125, %v86_v18 }
 0x144   :  { %v92_v20 = vadd.f32 1e-05, %v90_v19 }
 0x145   :  { %v89_v21 = vpop.xlane.xlu1 %88 }
 0x146   :  { %1875 = vrsqrt.f32 %v92_v20  ;;  %v91_v22 = vmul.f32 0.03125, %v89_v21 }
 0x148   :  { %v93_v23 = vadd.f32 1e-05, %v91_v22 }
 0x14a   :  { %1877 = vrsqrt.f32 %v93_v23 }
 0x153   :  { %v1876_v24 = vpop.eup %1875 }
 0x154   :  { %v96_v26 = vmul.f32 %v1876_v24, %v80_v6 }
 0x156   :  { %v105_v28 = vmul.f32 %v1676_v25, %v96_v26 }
 0x157   :  { %v1878_v29 = vpop.eup %1877 }
 0x158   :  { %v97_v30 = vmul.f32 %v1878_v29, %v81_v10  ;;  %v114_v31 = vadd.f32 %v1677_v27, %v105_v28 }
 0x15a   :  { %v106_v32 = vmul.f32 %v1676_v25, %v97_v30  ;;  %1760 = vmatprep.mubr.msk.f32.mxu0 %vm70_vm0, %v114_v31 }
 0x15c   :  { %v115_v33 = vadd.f32 %v1677_v27, %v106_v32 }
 0x15e   :  { %1761 = vmatmul.mubr.msk.f32.vlgmr.msra.gmra.mxu0 %vm70_vm0, %v115_v33 }
 0x15f   :  { %1785 = vmatprep.mubr.msk.f32.mxu0 %vm2003_vm1, %v2002_v34 }
 0x21e   :  { %v1762_v36 = vpop.f32.mrf.mxu0 }
 0x21f   :  { %v2097_v37 = vadd.f32 %v1762_v36, %v1678_v35 }
 0x220   :  { %v199_v38 = vpop.f32.mrf.mxu0 }
 0x221   :  { %v2099_v39 = vadd.f32 %v1678_v35, %v199_v38  ;;  %287 = vrot.lane.b32.xlu1 %v2097_v37, %s2004_s19 }
 0x223   :  { %209 = vrot.lane.b32.xlu0 %v2099_v39, %s2004_s19 }
 0x293   :  { %v288_v41 = vpop.permute.xlu1 %287 }
 0x295   :  { %v210_v40 = vpop.permute.xlu0 %209 }
 0x296   :  { %1764 = vmatpush3.xpose.msk.msra.mxu1 %vm211_vm2, %v210_v40 }
 0x297   :  { %1768 = vmatprep.subr.mxu1 %v2002_v34 }
 0x299   :  { %1766 = vmatmul.mubr.msk.f32.vlgmr.msra.gmra.mxu1 %vm211_vm2, %v2099_v39 }
 0x29a   :  { %1769 = vmatpush3.xpose.msk.msra.mxu1 %vm211_vm2, %v288_v41  ;;  %1770 = vmatprep.mubr.msk.f32.mxu1 %vm2003_vm1, %v2002_v34 }
 0x29b   :  { %1773 = vmatprep.subr.mxu1 %v2002_v34 }
 0x29d   :  { %1771 = vmatmul.mubr.msk.f32.vlgmr.msra.gmra.mxu1 %vm211_vm2, %v2097_v37 }
 0x29e   :  { %1775 = vmatprep.mubr.msk.f32.mxu1 %vm2003_vm1, %v2002_v34 }
 0x359   :  { %v282_v42 = vpop.f32.mrf.mxu1 }
 0x35a   :  { %v363_v43 = vsel %vm211_vm2, %v282_v42, -inf }
 0x35b   :  { %364 = vmax.xlane.f32.xlu1 %v363_v43  ;;  %v1767_v44 = vpop.f32.mrf.mxu1 }
 0x35d   :  { %v359_v45 = vpop.f32.mrf.mxu1 }
 0x35e   :  { %v366_v46 = vsel %vm211_vm2, %v359_v45, -inf }
 0x35f   :  { %367 = vmax.xlane.f32.xlu0 %v366_v46  ;;  %v1772_v47 = vpop.f32.mrf.mxu1 }
 0x36c   :  { %461 = vrot.lane.b32.xlu1 %v2097_v37, %s2005_s4 }
 0x370   :  { %541 = vrot.lane.b32.xlu1 %v2099_v39, %s2006_s20 }
 0x374   :  { %619 = vrot.lane.b32.xlu1 %v2097_v37, %s2006_s20 }
 0x3e4   :  { %v365_v48 = vpop.xlane.xlu1 %364 }
 0x3e5   :  { %v369_v49 = vsub.f32 %v282_v42, %v365_v48 }
 0x3e7   :  { %v371_v50 = vmul.f32 1.442695, %v369_v49 }
 0x3e8   :  { %v462_v51 = vpop.permute.xlu1 %461  ;;  %v368_v52 = vpop.xlane.xlu0 %367 }
 0x3e9   :  { %1879 = vpow2.f32 %v371_v50  ;;  %v370_v53 = vsub.f32 %v359_v45, %v368_v52 }
 0x3eb   :  { %v373_v54 = vmul.f32 1.442695, %v370_v53 }
 0x3ec   :  { %v542_v55 = vpop.permute.xlu1 %541 }
 0x3ed   :  { %1881 = vpow2.f32 %v373_v54  ;;  %1784 = vmatpush3.xpose.msk.msra.mxu0 %vm211_vm2, %v542_v55 }
 0x3ee   :  { %1793 = vmatprep.subr.mxu0 %v2002_v34 }
 0x3f0   :  { %v620_v60 = vpop.permute.xlu1 %619 }
 0x3f6   :  { %v1880_v56 = vpop.eup %1879 }
 0x3f7   :  { %v375_v57 = vsel %vm211_vm2, %v1880_v56, 0.0 }
 0x3f8   :  { %376 = vadd.xlane.f32.xlu0 %v375_v57 }
 0x3fa   :  { %v1882_v58 = vpop.eup %1881 }
 0x3fb   :  { %v378_v59 = vsel %vm211_vm2, %v1882_v58, 0.0 }
 0x3fc   :  { %379 = vadd.xlane.f32.xlu1 %v378_v59 }
 0x40d   :  { %617 = vrot.lane.b32.xlu1 %v2097_v37, %s2007_s21 }
 0x40e   :  { %385 = vrot.lane.b32.xlu0 %v2099_v39, %s2005_s4 }
 0x412   :  { %539 = vrot.lane.b32.xlu0 %v2099_v39, %s2007_s21 }
 0x481   :  { %v377_v61 = vpop.xlane.xlu0 %376 }
 0x482   :  { %1883 = vrcp.f32 %v377_v61 }
 0x485   :  { %v380_v62 = vpop.xlane.xlu1 %379  ;;  %v386_v63 = vpop.permute.xlu0 %385 }
 0x486   :  { %1885 = vrcp.f32 %v380_v62  ;;  %1774 = vmatpush3.msra.mxu1 %v386_v63 }
 0x487   :  { %1778 = vmatprep.subr.mxu1 %v2002_v34 }
 0x489   :  { %v540_v0 = vpop.permute.xlu0 %539  ;;  %v618_v5 = vpop.permute.xlu1 %617 }
 0x48a   :  { %1786 = vmatmul.mubr.msk.f32.vlgmr.msra.gmra.mxu0 %vm211_vm2, %v540_v0 }
 0x48b   :  { %1795 = vmatprep.mubr.msk.f32.mxu0 %vm2003_vm1, %v2002_v34 }
 0x48f   :  { %v1884_v1 = vpop.eup %1883 }
 0x490   :  { %v382_v2 = vmul.f32 %v1884_v1, %v1880_v56 }
 0x492   :  { %1776 = vmatmul.mubr.msk.f32.vlgmr.msra.gmra.mxu1 %vm211_vm2, %v382_v2 }
 0x493   :  { %v1886_v3 = vpop.eup %1885  ;;  %1779 = vmatpush3.msra.mxu1 %v462_v51  ;;  %1780 = vmatprep.mubr.msk.f32.mxu1 %vm2003_vm1, %v2002_v34 }
 0x494   :  { %1788 = vmatprep.subr.mxu1 %v2002_v34  ;;  %v384_v4 = vmul.f32 %v1886_v3, %v1882_v58 }
 0x496   :  { %1781 = vmatmul.mubr.msk.f32.vlgmr.msra.gmra.mxu1 %vm211_vm2, %v384_v4 }
 0x497   :  { %1789 = vmatpush3.xpose.msk.msra.mxu1 %vm211_vm2, %v620_v60  ;;  %1790 = vmatprep.mubr.msk.f32.mxu1 %vm2003_vm1, %v2002_v34 }
 0x498   :  { %1798 = vmatprep.subr.mxu1 %v2002_v34 }
 0x49a   :  { %1791 = vmatmul.mubr.msk.f32.vlgmr.msra.gmra.mxu1 %vm211_vm2, %v618_v5 }
 0x49b   :  { %1800 = vmatprep.mubr.msk.f32.mxu1 %vm2003_vm1, %v2002_v34 }
 0x54a   :  { %v613_v6 = vpop.f32.mrf.mxu0 }
 0x54b   :  { %v695_v7 = vsel %vm211_vm2, %v613_v6, -inf }
 0x54c   :  { %696 = vmax.xlane.f32.xlu0 %v695_v7  ;;  %v1787_v8 = vpop.f32.mrf.mxu0 }
 0x552   :  { %v457_v9 = vpop.f32.mrf.mxu1 }
 0x553   :  { %537 = vst.msk [vmem:[#allocation2] sm:$0xff] %vm211_vm2, %v457_v9 }
 0x554   :  { %v1777_v10 = vpop.f32.mrf.mxu1 }
 0x556   :  { %v533_v11 = vpop.f32.mrf.mxu1 }
 0x557   :  { %538 = vst.msk [vmem:[#allocation2 + $0x8] sm:$0xff] %vm211_vm2, %v533_v11 }
 0x558   :  { %v1782_v12 = vpop.f32.mrf.mxu1 }
 0x55a   :  { %v691_v13 = vpop.f32.mrf.mxu1 }
 0x55b   :  { %v698_v14 = vsel %vm211_vm2, %v691_v13, -inf }
 0x55c   :  { %699 = vmax.xlane.f32.xlu1 %v698_v14  ;;  %v1792_v15 = vpop.f32.mrf.mxu1 }
 0x56d   :  { %793 = vrot.lane.b32.xlu1 %v2097_v37, %s2008_s22 }
 0x571   :  { %882 = vrot.lane.b32.xlu1 %v2099_v39, %s2009_s23 }
 0x575   :  { %960 = vrot.lane.b32.xlu1 %v2097_v37, %s2009_s23 }
 0x579   :  { %958 = vrot.lane.b32.xlu1 %v2097_v37, %s2010_s24 }
 0x5d5   :  { %v697_v16 = vpop.xlane.xlu0 %696 }
 0x5d6   :  { %v701_v17 = vsub.f32 %v613_v6, %v697_v16 }
 0x5d8   :  { %v703_v18 = vmul.f32 1.442695, %v701_v17 }
 0x5da   :  { %1887 = vpow2.f32 %v703_v18 }
 0x5e5   :  { %v700_v19 = vpop.xlane.xlu1 %699 }
 0x5e6   :  { %v702_v23 = vsub.f32 %v691_v13, %v700_v19 }
 0x5e7   :  { %v1888_v20 = vpop.eup %1887 }
 0x5e8   :  { %v707_v21 = vsel %vm211_vm2, %v1888_v20, 0.0  ;;  %v705_v24 = vmul.f32 1.442695, %v702_v23 }
 0x5e9   :  { %708 = vadd.xlane.f32.xlu0 %v707_v21  ;;  %v794_v22 = vpop.permute.xlu1 %793 }
 0x5ea   :  { %1799 = vmatpush3.msra.mxu1 %v794_v22  ;;  %1889 = vpow2.f32 %v705_v24 }
 0x5eb   :  { %1808 = vmatprep.subr.mxu1 %v2002_v34 }
 0x5ed   :  { %v883_v31 = vpop.permute.xlu1 %882 }
 0x5f1   :  { %v961_v36 = vpop.permute.xlu1 %960 }
 0x5f5   :  { %v959_v40 = vpop.permute.xlu1 %958 }
 0x5f7   :  { %v1890_v25 = vpop.eup %1889 }
 0x5f8   :  { %v710_v26 = vsel %vm211_vm2, %v1890_v25, 0.0 }
 0x5ff   :  { %717 = vrot.lane.b32.xlu0 %v2099_v39, %s2008_s22 }
 0x61e   :  { %711 = vadd.xlane.f32.xlu0 %v710_v26 }
 0x634   :  { %880 = vrot.lane.b32.xlu0 %v2099_v39, %s2010_s24 }
 0x672   :  { %v709_v27 = vpop.xlane.xlu0 %708 }
 0x673   :  { %1891 = vrcp.f32 %v709_v27 }
 0x676   :  { %v718_v28 = vpop.permute.xlu0 %717 }
 0x677   :  { %1794 = vmatpush3.msra.mxu0 %v718_v28 }
 0x678   :  { %1803 = vmatprep.subr.mxu0 %v2002_v34 }
 0x680   :  { %v1892_v29 = vpop.eup %1891 }
 0x681   :  { %v714_v30 = vmul.f32 %v1892_v29, %v1888_v20 }
 0x683   :  { %1796 = vmatmul.mubr.msk.f32.vlgmr.msra.gmra.mxu0 %vm211_vm2, %v714_v30 }
 0x684   :  { %1804 = vmatpush3.xpose.msk.msra.mxu0 %vm211_vm2, %v883_v31  ;;  %1805 = vmatprep.mubr.msk.f32.mxu0 %vm2003_vm1, %v2002_v34 }
 0x685   :  { %1813 = vmatprep.subr.mxu0 %v2002_v34 }
 0x6a7   :  { %v712_v32 = vpop.xlane.xlu0 %711 }
 0x6a8   :  { %1893 = vrcp.f32 %v712_v32 }
 0x6ab   :  { %v881_v33 = vpop.permute.xlu0 %880 }
 0x6ac   :  { %1806 = vmatmul.mubr.msk.f32.vlgmr.msra.gmra.mxu0 %vm211_vm2, %v881_v33 }
 0x6ad   :  { %1815 = vmatprep.mubr.msk.f32.mxu0 %vm2003_vm1, %v2002_v34 }
 0x6b5   :  { %v1894_v35 = vpop.eup %1893 }
 0x6b6   :  { %v716_v38 = vmul.f32 %v1894_v35, %v1890_v25 }
 0x6b8   :  { %1801 = vmatmul.mubr.msk.f32.vlgmr.msra.gmra.mxu1 %vm211_vm2, %v716_v38 }
 0x6b9   :  { %1809 = vmatpush3.xpose.msk.msra.mxu1 %vm211_vm2, %v961_v36  ;;  %1810 = vmatprep.mubr.msk.f32.mxu1 %vm2003_vm1, %v2002_v34 }
 0x6ba   :  { %1818 = vmatprep.subr.mxu1 %v2002_v34 }
 0x6bc   :  { %1811 = vmatmul.mubr.msk.f32.vlgmr.msra.gmra.mxu1 %vm211_vm2, %v959_v40 }
 0x6bd   :  { %1820 = vmatprep.mubr.msk.f32.mxu1 %vm2003_vm1, %v2002_v34 }
 0x743   :  { %v2173_v41 = vpop.f32.mrf.mxu0 }
 0x745   :  { %v1797_v42 = vpop.f32.mrf.mxu0 }
 0x746   :  { %v1567_v42 = vld [vmem:[#allocation8 + $0x18] sm:$0xff] }
 0x76c   :  { %v954_v43 = vpop.f32.mrf.mxu0 }
 0x76d   :  { %v1036_v44 = vsel %vm211_vm2, %v954_v43, -inf }
 0x76e   :  { %1037 = vmax.xlane.f32.xlu0 %v1036_v44  ;;  %v1807_v45 = vpop.f32.mrf.mxu0  ;;  %v1565_v44 = vld [vmem:[#allocation8 + $0x8] sm:$0xff] }
 0x778   :  { %v2176_v46 = vpop.f32.mrf.mxu1 }
 0x77a   :  { %v1802_v47 = vpop.f32.mrf.mxu1 }
 0x77c   :  { %v1032_v48 = vpop.f32.mrf.mxu1 }
 0x77d   :  { %v1039_v49 = vsel %vm211_vm2, %v1032_v48, -inf }
 0x77e   :  { %1040 = vmax.xlane.f32.xlu1 %v1039_v49  ;;  %v1812_v50 = vpop.f32.mrf.mxu1 }
 0x78f   :  { %1134 = vrot.lane.b32.xlu1 %v2097_v37, %s2011_s25 }
 0x793   :  { %1223 = vrot.lane.b32.xlu1 %v2099_v39, %s2012_s26 }
 0x797   :  { %1301 = vrot.lane.b32.xlu1 %v2097_v37, %s2012_s26 }
 0x79b   :  { %1299 = vrot.lane.b32.xlu1 %v2097_v37, %s2013_s27 }
 0x7f7   :  { %v1038_v51 = vpop.xlane.xlu0 %1037 }
 0x7f8   :  { %v1042_v52 = vsub.f32 %v954_v43, %v1038_v51 }
 0x7fa   :  { %v1044_v53 = vmul.f32 1.442695, %v1042_v52 }
 0x7fc   :  { %1895 = vpow2.f32 %v1044_v53  ;;  %v1705_v53 = vld [vmem:[%s2238_s6] ss:$0 sm:$0xff] }
 0x807   :  { %v1041_v54 = vpop.xlane.xlu1 %1040 }
 0x808   :  { %v1043_v58 = vsub.f32 %v1032_v48, %v1041_v54 }
 0x809   :  { %v1896_v55 = vpop.eup %1895 }
 0x80a   :  { %v1048_v56 = vsel %vm211_vm2, %v1896_v55, 0.0  ;;  %v1046_v59 = vmul.f32 1.442695, %v1043_v58 }
 0x80b   :  { %1049 = vadd.xlane.f32.xlu0 %v1048_v56  ;;  %v1135_v57 = vpop.permute.xlu1 %1134 }
 0x80c   :  { %1819 = vmatpush3.msra.mxu1 %v1135_v57  ;;  %1897 = vpow2.f32 %v1046_v59 }
 0x80d   :  { %1828 = vmatprep.subr.mxu1 %v2002_v34 }
 0x80f   :  { %v1224_v2 = vpop.permute.xlu1 %1223 }
 0x813   :  { %v1302_v6 = vpop.permute.xlu1 %1301 }
 0x817   :  { %v1300_v8 = vpop.permute.xlu1 %1299 }
 0x819   :  { %v1898_v60 = vpop.eup %1897 }
 0x81a   :  { %v1051_v61 = vsel %vm211_vm2, %v1898_v60, 0.0 }
 0x821   :  { %1058 = vrot.lane.b32.xlu0 %v2099_v39, %s2011_s25 }
 0x840   :  { %1052 = vadd.xlane.f32.xlu0 %v1051_v61 }
 0x856   :  { %1221 = vrot.lane.b32.xlu0 %v2099_v39, %s2013_s27 }
 0x894   :  { %v1050_v62 = vpop.xlane.xlu0 %1049 }
 0x895   :  { %1899 = vrcp.f32 %v1050_v62 }
 0x898   :  { %v1059_v63 = vpop.permute.xlu0 %1058 }
 0x899   :  { %1814 = vmatpush3.msra.mxu0 %v1059_v63 }
 0x89a   :  { %1823 = vmatprep.subr.mxu0 %v2002_v34 }
 0x8a2   :  { %v1900_v0 = vpop.eup %1899 }
 0x8a3   :  { %v1055_v1 = vmul.f32 %v1900_v0, %v1896_v55 }
 0x8a5   :  { %1816 = vmatmul.mubr.msk.f32.vlgmr.msra.gmra.mxu0 %vm211_vm2, %v1055_v1 }
 0x8a6   :  { %1824 = vmatpush3.xpose.msk.msra.mxu0 %vm211_vm2, %v1224_v2  ;;  %1825 = vmatprep.mubr.msk.f32.mxu0 %vm2003_vm1, %v2002_v34 }
 0x8a7   :  { %1833 = vmatprep.subr.mxu0 %v2002_v34 }
 0x8c9   :  { %v1053_v3 = vpop.xlane.xlu0 %1052 }
 0x8ca   :  { %1901 = vrcp.f32 %v1053_v3 }
 0x8cd   :  { %v1222_v4 = vpop.permute.xlu0 %1221 }
 0x8ce   :  { %1826 = vmatmul.mubr.msk.f32.vlgmr.msra.gmra.mxu0 %vm211_vm2, %v1222_v4 }
 0x8cf   :  { %1835 = vmatprep.mubr.msk.f32.mxu0 %vm2003_vm1, %v2002_v34 }
 0x8d7   :  { %v1902_v5 = vpop.eup %1901 }
 0x8d8   :  { %v1057_v7 = vmul.f32 %v1902_v5, %v1898_v60 }
 0x8da   :  { %1821 = vmatmul.mubr.msk.f32.vlgmr.msra.gmra.mxu1 %vm211_vm2, %v1057_v7 }
 0x8db   :  { %1829 = vmatpush3.xpose.msk.msra.mxu1 %vm211_vm2, %v1302_v6  ;;  %1830 = vmatprep.mubr.msk.f32.mxu1 %vm2003_vm1, %v2002_v34 }
 0x8dc   :  { %1838 = vmatprep.subr.mxu1 %v2002_v34 }
 0x8de   :  { %1831 = vmatmul.mubr.msk.f32.vlgmr.msra.gmra.mxu1 %vm211_vm2, %v1300_v8 }
 0x8df   :  { %1840 = vmatprep.mubr.msk.f32.mxu1 %vm2003_vm1, %v2002_v34 }
 0x965   :  { %v1130_v9 = vpop.f32.mrf.mxu0 }
 0x967   :  { %v1817_v10 = vpop.f32.mrf.mxu0 }
 0x98e   :  { %v1295_v11 = vpop.f32.mrf.mxu0 }
 0x98f   :  { %v1377_v12 = vsel %vm211_vm2, %v1295_v11, -inf }
 0x990   :  { %1378 = vmax.xlane.f32.xlu0 %v1377_v12  ;;  %v1827_v13 = vpop.f32.mrf.mxu0 }
 0x99a   :  { %v1206_v14 = vpop.f32.mrf.mxu1 }
 0x99c   :  { %v1822_v15 = vpop.f32.mrf.mxu1 }
 0x99e   :  { %v1373_v16 = vpop.f32.mrf.mxu1 }
 0x99f   :  { %v1380_v17 = vsel %vm211_vm2, %v1373_v16, -inf }
 0x9a0   :  { %1381 = vmax.xlane.f32.xlu1 %v1380_v17  ;;  %v1832_v18 = vpop.f32.mrf.mxu1 }
 0x9b1   :  { %1475 = vrot.lane.b32.xlu1 %v2097_v37, %s2014_s28 }
 0x9b5   :  { %871 = vrot.lane.b32.xlu1 %v2173_v41, %s2000_s30 }
 0x9b9   :  { %873 = vrot.lane.b32.xlu1 %v2176_v46, %s2000_s30  ;;  %v1564_v46 = vld [vmem:[#allocation8] sm:$0xff] }
 0x9bd   :  { %1214 = vrot.lane.b32.xlu1 %v1206_v14, %s2015_s8 }
 0xa19   :  { %v1379_v34 = vpop.xlane.xlu0 %1378 }
 0xa1a   :  { %v1383_v19 = vsub.f32 %v1295_v11, %v1379_v34 }
 0xa1c   :  { %v1385_v20 = vmul.f32 1.442695, %v1383_v19 }
 0xa1e   :  { %1903 = vpow2.f32 %v1385_v20 }
 0xa29   :  { %v1382_v21 = vpop.xlane.xlu1 %1381 }
 0xa2a   :  { %v1384_v22 = vsub.f32 %v1373_v16, %v1382_v21 }
 0xa2b   :  { %v1904_v23 = vpop.eup %1903 }
 0xa2c   :  { %v1387_v24 = vmul.f32 1.442695, %v1384_v22  ;;  %v1389_v25 = vsel %vm211_vm2, %v1904_v23, 0.0 }
 0xa2d   :  { %1390 = vadd.xlane.f32.xlu0 %v1389_v25  ;;  %v1476_v37 = vpop.permute.xlu1 %1475 }
 0xa2e   :  { %1905 = vpow2.f32 %v1387_v24  ;;  %1839 = vmatpush3.msra.mxu1 %v1476_v37 }
 0xa31   :  { %v872_v26 = vpop.permute.xlu1 %871 }
 0xa32   :  { %878 = vst.msk [vmem:[#allocation2] sm:$0xff] %vm877_vm3, %v872_v26 }
 0xa35   :  { %v874_v27 = vpop.permute.xlu1 %873 }
 0xa36   :  { %879 = vst.msk [vmem:[#allocation2 + $0x8] sm:$0xff] %vm877_vm3, %v874_v27 }
 0xa39   :  { %v1215_v28 = vpop.permute.xlu1 %1214 }
 0xa3a   :  { %1220 = vst.msk [vmem:[#allocation2 + $0x8] sm:$0xff] %vm1218_vm4, %v1215_v28 }
 0xa3b   :  { %v1906_v29 = vpop.eup %1905 }
 0xa3c   :  { %v1392_v30 = vsel %vm211_vm2, %v1906_v29, 0.0 }
 0xa3d   :  { %1393 = vadd.xlane.f32.xlu0 %v1392_v30 }
 0xa53   :  { %1399 = vrot.lane.b32.xlu0 %v2099_v39, %s2014_s28  ;;  %v1566_v39 = vld [vmem:[#allocation8 + $0x10] sm:$0xff] }
 0xa57   :  { %1212 = vrot.lane.b32.xlu0 %v1130_v9, %s2015_s8 }
 0xab6   :  { %v1391_v31 = vpop.xlane.xlu0 %1390 }
 0xab7   :  { %1907 = vrcp.f32 %v1391_v31 }
 0xac4   :  { %v1908_v33 = vpop.eup %1907 }
 0xac5   :  { %v1396_v36 = vmul.f32 %v1908_v33, %v1904_v23 }
 0xac6   :  { %v1394_v32 = vpop.xlane.xlu0 %1393 }
 0xac7   :  { %1909 = vrcp.f32 %v1394_v32 }
 0xaca   :  { %v1400_v35 = vpop.permute.xlu0 %1399 }
 0xacb   :  { %1834 = vmatpush3.msra.mxu0 %v1400_v35 }
 0xacc   :  { %1836 = vmatmul.mubr.msk.f32.vlgmr.msra.gmra.mxu0 %vm211_vm2, %v1396_v36  ;;  %1843 = vmatprep.subr.mxu0 %v1567_v42 }
 0xacd   :  { %1844 = vmatpush3.msra.mxu0 %v1567_v42 }
 0xace   :  { %v1213_v38 = vpop.permute.xlu0 %1212  ;;  %1845 = vmatprep.subr.mxu0 %v1566_v39 }
 0xacf   :  { %1219 = vst.msk [vmem:[#allocation2] sm:$0xff] %vm1218_vm4, %v1213_v38  ;;  %1846 = vmatpush3.msra.mxu0 %v1566_v39 }
 0xad0   :  { %1847 = vmatprep.subr.mxu0 %v1565_v44 }
 0xad1   :  { %1848 = vmatpush3.msra.mxu0 %v1565_v44 }
 0xad2   :  { %1849 = vmatprep.subr.mxu0 %v1564_v46 }
 0xad3   :  { %1850 = vmatpush3.msra.mxu0 %v1564_v46 }
 0xad4   :  { %v1910_v40 = vpop.eup %1909 }
 0xad5   :  { %v1398_v41 = vmul.f32 %v1910_v40, %v1906_v29 }
 0xad7   :  { %1841 = vmatmul.mubr.msk.f32.vlgmr.msra.gmra.mxu1 %vm211_vm2, %v1398_v41 }
 0xb8c   :  { %v1471_v43 = vpop.f32.mrf.mxu0 }
 0xb8d   :  { %1553 = vrot.lane.b32.xlu0 %v1471_v43, %s2016_s9 }
 0xb8e   :  { %v1837_v45 = vpop.f32.mrf.mxu0 }
 0xb97   :  { %v1547_v47 = vpop.f32.mrf.mxu1 }
 0xb98   :  { %1555 = vrot.lane.b32.xlu1 %v1547_v47, %s2016_s9 }
 0xb99   :  { %v1842_v48 = vpop.f32.mrf.mxu1 }
 0xbff   :  { %v1554_v49 = vpop.permute.xlu0 %1553 }
 0xc00   :  { %1560 = vst.msk [vmem:[#allocation2] sm:$0xff] %vm1559_vm5, %v1554_v49 }
 0xc07   :  { %v1562_v50 = vld [vmem:[#allocation2] sm:$0xff] }
 0xc08   :  { %1851 = vmatprep.mubr.msk.f32.mxu0 %vm70_vm0, %v1562_v50 }
 0xc0a   :  { %v1556_v51 = vpop.permute.xlu1 %1555 }
 0xc0b   :  { %1561 = vst.msk [vmem:[#allocation2 + $0x8] sm:$0xff] %vm1559_vm5, %v1556_v51 }
 0xc12   :  { %v1563_v52 = vld [vmem:[#allocation2 + $0x8] sm:$0xff] }
 0xc13   :  { %1852 = vmatmul.mubr.msk.f32.vlgmr.msra.gmra.mxu0 %vm70_vm0, %v1563_v52 }
 0xcd3   :  { %v1853_v54 = vpop.f32.mrf.mxu0 }
 0xcd4   :  { %v1653_v55 = vadd.f32 %v1853_v54, %v1705_v53 }
 0xcd5   :  { %v1647_v56 = vpop.f32.mrf.mxu0 }
 0xcd6   :  { %1657 = vst.msk [vmem:[#allocation9 + $0x8] sm:$0xff] %vm70_vm0, %v1653_v55  ;;  %v1648_v57 = vadd.f32 %v1705_v53, %v1647_v56 }
 0xcd8   :  { %1656 = vst.msk [vmem:[#allocation9] sm:$0xff] %vm70_vm0, %v1648_v57 }
 0xcd9   :  { %1982 = shalt.err (!%p1979_p5)
}
 0xcda   :  { %1669 = dma.vmem_to_hbm [thread:$0]  %s1664_s13, 256, %s2239_s7, [#allocation5], %s1999_s29, %s1999_s29, %s2000_s30  }
 0xcdb   :  { %1995 = dma.done.wait [#allocation5], 256  }
 0xcdc   :  { %1996 = vsyncadd [#allocation5], 4294967040 }
 0xcdd   :  { %1673 = vsyncpa [#allocation4], 1 }
 0xcde   :  { %1674 = vsyncpa [#allocation7], 1 }
 0xcdf   :  { %1675 = vsyncpa [#allocation5], 1 }

</bundles_post_ra>
